<compile_context>
chip_gen: v6e
topology: v6e:2x2x1
jax: 0.10.0
libtpu: 0.0.40
codegen_flags: <defaults>
</compile_context>

<pallas_src>
import jax
import jax.numpy as jnp
from jax.experimental import pallas as pl
from jax.experimental.pallas import tpu as pltpu


def _round_up(x, m):
    return ((x + m - 1) // m) * m


def _make_policy_kernel(action_dim, log_std_min_max):
    clamp = float(log_std_min_max)
    A = int(action_dim)

    def policy_kernel(x_ref, w1_ref, b1_ref, w2_ref, b2_ref, wh_ref, bh_ref,
                      out_ref):
        # bf16 operands on the MXU, f32 accumulation; elementwise stays f32.
        x = x_ref[...].astype(jnp.bfloat16)

        # lay1 + ReLU
        h1 = jnp.dot(x, w1_ref[...], preferred_element_type=jnp.float32)
        h1 = jnp.maximum(h1 + b1_ref[...], 0.0)

        # lay2 + ReLU
        h2 = jnp.dot(h1.astype(jnp.bfloat16), w2_ref[...],
                     preferred_element_type=jnp.float32)
        h2 = jnp.maximum(h2 + b2_ref[...], 0.0)

        # fused heads: lanes [0:A] = mean, lanes [A:2A] = log_std
        head = jnp.dot(h2.astype(jnp.bfloat16), wh_ref[...],
                       preferred_element_type=jnp.float32) + bh_ref[...]

        # clamp only the log_std lanes; single lane-dense slab store.
        lane = jax.lax.broadcasted_iota(jnp.int32, head.shape, dimension=1)
        clipped = jnp.clip(head, -clamp, clamp)
        out_ref[...] = jnp.where(lane >= A, clipped, head).astype(out_ref.dtype)

    return policy_kernel


def policy_forward(state, params, log_std_min_max=20, block_b=256):
    """PolicyFunction.forward as a single batch-gridded Pallas TPU kernel.

    state:  [B, input_shape] float32
    params: dict with w1 [in,H], b1 [1,H], w2 [H,H], b2 [1,H],
            w_head [H,2A] (mean|std fused), b_head [1,2A]
    returns (mean [B,A], log_std [B,A])
    """
    B, D_in = state.shape
    H = params["w1"].shape[1]
    A2 = params["w_head"].shape[1]
    A = A2 // 2

    # Batch tile: multiple of 8 (sublane), capped by block_b.  block_b=256 is
    # small enough for v7x's 64 MiB VMEM with double-buffering to spare.
    TB = _round_up(min(int(block_b), _round_up(B, 8)), 8)
    Bp = _round_up(B, TB)
    x = state if Bp == B else jnp.pad(state, ((0, Bp - B), (0, 0)))

    # Cast weights to bf16 once in the wrapper (not per grid step).
    w1 = params["w1"].astype(jnp.bfloat16)
    w2 = params["w2"].astype(jnp.bfloat16)
    wh = params["w_head"].astype(jnp.bfloat16)
    b1, b2, bh = params["b1"], params["b2"], params["b_head"]

    grid = (Bp // TB,)

    def resident(arr):
        # Full-array block, same block every grid step -> DMA'd once, stays in VMEM.
        return pl.BlockSpec(arr.shape, lambda i: (0, 0),
                            memory_space=pltpu.MemorySpace.VMEM)

    flops = 2 * Bp * (D_in * H + H * H + H * A2)
    bytes_accessed = (x.size * 4 + w1.size * 2 + w2.size * 2 + wh.size * 2 +
                      b1.size * 4 + b2.size * 4 + bh.size * 4 + Bp * A2 * 4)

    kernel = _make_policy_kernel(A, log_std_min_max)

    head = pl.pallas_call(
        kernel,
        out_shape=jax.ShapeDtypeStruct((Bp, A2), jnp.float32),
        grid=grid,
        in_specs=[
            pl.BlockSpec((TB, D_in), lambda i: (i, 0),
                         memory_space=pltpu.MemorySpace.VMEM),
            resident(w1), resident(b1),
            resident(w2), resident(b2),
            resident(wh), resident(bh),
        ],
        out_specs=pl.BlockSpec((TB, A2), lambda i: (i, 0),
                               memory_space=pltpu.MemorySpace.VMEM),
        compiler_params=pltpu.CompilerParams(
            dimension_semantics=("parallel",)),
        cost_estimate=pl.CostEstimate(flops=flops, transcendentals=0,
                                      bytes_accessed=bytes_accessed),
    )(x, w1, b1, w2, b2, wh, bh)

    head = head[:B]
    return head[:, :A], head[:, A:]


def init_params(key, input_shape, action_dimension, hidden_units):
    """Deterministic parameter init (PyTorch nn.Linear-style uniform bounds)."""
    def linear(k, fan_in, fan_out):
        kw, kb = jax.random.split(k)
        bound = 1.0 / jnp.sqrt(float(fan_in))
        # stored as [in, out] so the kernel does x @ W
        w = jax.random.uniform(kw, (fan_in, fan_out), jnp.float32, -bound, bound)
        b = jax.random.uniform(kb, (1, fan_out), jnp.float32, -bound, bound)
        return w, b

    k1, k2, k3, k4 = jax.random.split(key, 4)
    w1, b1 = linear(k1, input_shape, hidden_units)
    w2, b2 = linear(k2, hidden_units, hidden_units)
    wm, bm = linear(k3, hidden_units, action_dimension)
    ws, bs = linear(k4, hidden_units, action_dimension)
    # Fuse the two heads once at init: lanes [0:A]=mean, [A:2A]=log_std.
    w_head = jnp.concatenate([wm, ws], axis=1)
    b_head = jnp.concatenate([bm, bs], axis=1)
    return dict(w1=w1, b1=b1, w2=w2, b2=b2,
                w_head=w_head, b_head=b_head,
                wm=wm, bm=bm, ws=ws, bs=bs)


def policy_forward_ref(state, params, log_std_min_max=20):
    """Pure-JAX f32 reference for correctness checking."""
    h1 = jnp.maximum(state @ params["w1"] + params["b1"], 0.0)
    h2 = jnp.maximum(h1 @ params["w2"] + params["b2"], 0.0)
    mean = h2 @ params["wm"] + params["bm"]
    log_std = jnp.clip(h2 @ params["ws"] + params["bs"],
                       -log_std_min_max, log_std_min_max)
    return mean, log_std


if __name__ == "__main__":
    # Small shapes consistent with the module: batch=8, input=16, hidden=32, actions=4.
    B, D_IN, HID, A_DIM = 8, 16, 32, 4

    key = jax.random.PRNGKey(0)
    k_params, k_state, k_state2 = jax.random.split(key, 3)

    params = init_params(k_params, D_IN, A_DIM, HID)

    # --- small batch (single grid step) -------------------------------------
    state = jax.random.normal(k_state, (B, D_IN), jnp.float32)
    mean, log_std = policy_forward(state, params, log_std_min_max=20)
    jax.block_until_ready((mean, log_std))

    mean_ref, log_std_ref = policy_forward_ref(state, params, log_std_min_max=20)
    assert mean.shape == (B, A_DIM) and log_std.shape == (B, A_DIM)
    # bf16 MXU operands -> relaxed tolerance vs. the f32 reference.
    assert jnp.allclose(mean, mean_ref, atol=5e-2, rtol=5e-2)
    assert jnp.allclose(log_std, log_std_ref, atol=5e-2, rtol=5e-2)

    # --- larger, non-multiple batch: exercises the batch grid + padding path --
    B2 = 300
    state2 = jax.random.normal(k_state2, (B2, D_IN), jnp.float32)
    mean2, log_std2 = policy_forward(state2, params, log_std_min_max=20, block_b=128)
    jax.block_until_ready((mean2, log_std2))

    mean2_ref, log_std2_ref = policy_forward_ref(state2, params, log_std_min_max=20)
    assert mean2.shape == (B2, A_DIM) and log_std2.shape == (B2, A_DIM)
    assert jnp.allclose(mean2, mean2_ref, atol=5e-2, rtol=5e-2)
    assert jnp.allclose(log_std2, log_std2_ref, atol=5e-2, rtol=5e-2)

    print("KERNEL_OK")
</pallas_src>

<mosaic_0001>
module attributes {stable_mosaic.version = 11 : i64} {
  func.func @policy_kernel(%arg0: i32, %arg1: memref<8x16xf32, #tpu.memory_space<vmem>>, %arg2: memref<16x32xbf16, #tpu.memory_space<vmem>>, %arg3: memref<1x32xf32, #tpu.memory_space<vmem>>, %arg4: memref<32x32xbf16, #tpu.memory_space<vmem>>, %arg5: memref<1x32xf32, #tpu.memory_space<vmem>>, %arg6: memref<32x8xbf16, #tpu.memory_space<vmem>>, %arg7: memref<1x8xf32, #tpu.memory_space<vmem>>, %arg8: memref<8x8xf32, #tpu.memory_space<vmem>>) attributes {dimension_semantics = [#tpu.dimension_semantics<parallel>], iteration_bounds = array<i64: 1>, scalar_prefetch = 0 : i64, scratch_operands = 0 : i64, tpu.core_type = #tpu.core_type<tc>, window_params = [{transform_indices = @transform_0, window_bounds = array<i64: 8, 16>}, {pipeline_mode = #tpu.pipeline_mode<synchronous>, transform_indices = @transform_1, window_bounds = array<i64: 16, 32>}, {pipeline_mode = #tpu.pipeline_mode<synchronous>, transform_indices = @transform_2, window_bounds = array<i64: 1, 32>}, {pipeline_mode = #tpu.pipeline_mode<synchronous>, transform_indices = @transform_3, window_bounds = array<i64: 32, 32>}, {pipeline_mode = #tpu.pipeline_mode<synchronous>, transform_indices = @transform_4, window_bounds = array<i64: 1, 32>}, {pipeline_mode = #tpu.pipeline_mode<synchronous>, transform_indices = @transform_5, window_bounds = array<i64: 32, 8>}, {pipeline_mode = #tpu.pipeline_mode<synchronous>, transform_indices = @transform_6, window_bounds = array<i64: 1, 8>}, {transform_indices = @transform_7, window_bounds = array<i64: 8, 8>}]} {
    %c0 = arith.constant 0 : index
    %c0_0 = arith.constant 0 : index
    %0 = vector.load %arg1[%c0, %c0_0] : memref<8x16xf32, #tpu.memory_space<vmem>>, vector<8x16xf32>
    %1 = arith.truncf %0 : vector<8x16xf32> to vector<8x16xbf16>
    %c0_1 = arith.constant 0 : index
    %c0_2 = arith.constant 0 : index
    %2 = vector.load %arg2[%c0_1, %c0_2] : memref<16x32xbf16, #tpu.memory_space<vmem>>, vector<16x32xbf16>
    %cst = arith.constant dense<0.000000e+00> : vector<8x32xf32>
    %3 = tpu.matmul %1, %2, %cst {dimension_numbers = #tpu.dot_dimension_numbers<[1], [0], [0], [1], [0, 0, 1, 1], [], []>} : vector<8x16xbf16>, vector<16x32xbf16>, vector<8x32xf32> -> vector<8x32xf32>
    %c0_3 = arith.constant 0 : index
    %c0_4 = arith.constant 0 : index
    %4 = vector.load %arg3[%c0_3, %c0_4] : memref<1x32xf32, #tpu.memory_space<vmem>>, vector<1x32xf32>
    %5 = vector.broadcast %4 : vector<1x32xf32> to vector<8x32xf32>
    %6 = arith.addf %3, %5 : vector<8x32xf32>
    %cst_5 = arith.constant 0.000000e+00 : f32
    %7 = vector.broadcast %cst_5 : f32 to vector<8x32xf32>
    %8 = arith.maximumf %6, %7 : vector<8x32xf32>
    %9 = arith.truncf %8 : vector<8x32xf32> to vector<8x32xbf16>
    %c0_6 = arith.constant 0 : index
    %c0_7 = arith.constant 0 : index
    %10 = vector.load %arg4[%c0_6, %c0_7] : memref<32x32xbf16, #tpu.memory_space<vmem>>, vector<32x32xbf16>
    %cst_8 = arith.constant dense<0.000000e+00> : vector<8x32xf32>
    %11 = tpu.matmul %9, %10, %cst_8 {dimension_numbers = #tpu.dot_dimension_numbers<[1], [0], [0], [1], [0, 0, 1, 1], [], []>} : vector<8x32xbf16>, vector<32x32xbf16>, vector<8x32xf32> -> vector<8x32xf32>
    %c0_9 = arith.constant 0 : index
    %c0_10 = arith.constant 0 : index
    %12 = vector.load %arg5[%c0_9, %c0_10] : memref<1x32xf32, #tpu.memory_space<vmem>>, vector<1x32xf32>
    %13 = vector.broadcast %12 : vector<1x32xf32> to vector<8x32xf32>
    %14 = arith.addf %11, %13 : vector<8x32xf32>
    %cst_11 = arith.constant 0.000000e+00 : f32
    %15 = vector.broadcast %cst_11 : f32 to vector<8x32xf32>
    %16 = arith.maximumf %14, %15 : vector<8x32xf32>
    %17 = arith.truncf %16 : vector<8x32xf32> to vector<8x32xbf16>
    %c0_12 = arith.constant 0 : index
    %c0_13 = arith.constant 0 : index
    %18 = vector.load %arg6[%c0_12, %c0_13] : memref<32x8xbf16, #tpu.memory_space<vmem>>, vector<32x8xbf16>
    %cst_14 = arith.constant dense<0.000000e+00> : vector<8x8xf32>
    %19 = tpu.matmul %17, %18, %cst_14 {dimension_numbers = #tpu.dot_dimension_numbers<[1], [0], [0], [1], [0, 0, 1, 1], [], []>} : vector<8x32xbf16>, vector<32x8xbf16>, vector<8x8xf32> -> vector<8x8xf32>
    %c0_15 = arith.constant 0 : index
    %c0_16 = arith.constant 0 : index
    %20 = vector.load %arg7[%c0_15, %c0_16] : memref<1x8xf32, #tpu.memory_space<vmem>>, vector<1x8xf32>
    %21 = vector.broadcast %20 : vector<1x8xf32> to vector<8x8xf32>
    %22 = arith.addf %19, %21 : vector<8x8xf32>
    %23 = tpu.iota {dimensions = array<i32: 1>} : vector<8x8xi32>
    %cst_17 = arith.constant -2.000000e+01 : f32
    %cst_18 = arith.constant 2.000000e+01 : f32
    %24 = vector.broadcast %cst_17 : f32 to vector<8x8xf32>
    %25 = arith.maximumf %24, %22 : vector<8x8xf32>
    %26 = vector.broadcast %cst_18 : f32 to vector<8x8xf32>
    %27 = arith.minimumf %26, %25 : vector<8x8xf32>
    %c4_i32 = arith.constant 4 : i32
    %28 = vector.broadcast %c4_i32 : i32 to vector<8x8xi32>
    %29 = arith.cmpi sge, %23, %28 : vector<8x8xi32>
    %30 = arith.select %29, %27, %22 : vector<8x8xi1>, vector<8x8xf32>
    %c0_19 = arith.constant 0 : index
    %c0_20 = arith.constant 0 : index
    %31 = vector.load %arg8[%c0_19, %c0_20] : memref<8x8xf32, #tpu.memory_space<vmem>>, vector<8x8xf32>
    tpu.vector_store %arg8[%c0_19, %c0_20], %30 {strides = array<i32>} : memref<8x8xf32, #tpu.memory_space<vmem>>, vector<8x8xf32>,
    return
  }
  func.func @transform_0(%arg0: i32) -> (i32, i32) {
    %c0_i32 = arith.constant 0 : i32
    %c0_i32_0 = arith.constant 0 : i32
    return %arg0, %c0_i32 : i32, i32
  }
  func.func @transform_1(%arg0: i32) -> (i32, i32) {
    %c0_i32 = arith.constant 0 : i32
    %c0_i32_0 = arith.constant 0 : i32
    %c0_i32_1 = arith.constant 0 : i32
    return %c0_i32, %c0_i32_0 : i32, i32
  }
  func.func @transform_2(%arg0: i32) -> (i32, i32) {
    %c0_i32 = arith.constant 0 : i32
    %c0_i32_0 = arith.constant 0 : i32
    %c0_i32_1 = arith.constant 0 : i32
    return %c0_i32, %c0_i32_0 : i32, i32
  }
  func.func @transform_3(%arg0: i32) -> (i32, i32) {
    %c0_i32 = arith.constant 0 : i32
    %c0_i32_0 = arith.constant 0 : i32
    %c0_i32_1 = arith.constant 0 : i32
    return %c0_i32, %c0_i32_0 : i32, i32
  }
  func.func @transform_4(%arg0: i32) -> (i32, i32) {
    %c0_i32 = arith.constant 0 : i32
    %c0_i32_0 = arith.constant 0 : i32
    %c0_i32_1 = arith.constant 0 : i32
    return %c0_i32, %c0_i32_0 : i32, i32
  }
  func.func @transform_5(%arg0: i32) -> (i32, i32) {
    %c0_i32 = arith.constant 0 : i32
    %c0_i32_0 = arith.constant 0 : i32
    %c0_i32_1 = arith.constant 0 : i32
    return %c0_i32, %c0_i32_0 : i32, i32
  }
  func.func @transform_6(%arg0: i32) -> (i32, i32) {
    %c0_i32 = arith.constant 0 : i32
    %c0_i32_0 = arith.constant 0 : i32
    %c0_i32_1 = arith.constant 0 : i32
    return %c0_i32, %c0_i32_0 : i32, i32
  }
  func.func @transform_7(%arg0: i32) -> (i32, i32) {
    %c0_i32 = arith.constant 0 : i32
    %c0_i32_0 = arith.constant 0 : i32
    return %arg0, %c0_i32 : i32, i32
  }
}

</mosaic_0001>

<bundles_post_ra>
// kernel: tpu_custom_call.1
= control target key start
LH: loop header
LB: loop body
LE: loop exit
PB: predicated region body
PF: predicated region fallthrough
CT: control target
= control target key end

     0   :  { %12 = vsyncpa [#allocation3], 0  ;;  %s473_s0 = inlined_call_operand.vmem [shape: f32[8,16], index: 0, kind: input, shape index: {}]   ;;  %s474_s1 = inlined_call_operand.hbm [shape: bf16[16,32], index: 1, kind: input, shape index: {}]   ;;  %s475_s2 = inlined_call_operand.vmem [shape: f32[1,32], index: 2, kind: input, shape index: {}]   ;;  %s476_s3 = inlined_call_operand.vmem [shape: bf16[32,32], index: 3, kind: input, shape index: {}]   ;;  %s477_s4 = inlined_call_operand.hbm [shape: f32[1,32], index: 4, kind: input, shape index: {}]   ;;  %s478_s5 = inlined_call_operand.vmem [shape: bf16[32,8], index: 5, kind: input, shape index: {}]   ;;  %s479_s6 = inlined_call_operand.vmem [shape: f32[1,8], index: 6, kind: input, shape index: {}]   ;;  %s480_s7 = inlined_call_operand.hbm [shape: f32[8,8], index: 7, kind: output, shape index: {}]  }
   0x1   :  { %13 = vsyncpa [#allocation6], 0 }
   0x2   :  { %14 = vsyncpa [#allocation4], 0  ;;  %s396_s24 = smov [#allocation2]  }
   0x3   :  { %s22_s25 = sshll.u32 %s396_s24, 4  ;;  %s23_s25 = int_to_ptr.vmem [resolvable:$true] %s22_s25 }
   0x4   :  { %s338_s26 = scalar_lea.vmem %s23_s25, 128  ;;  %p343_p1 = scmp.lt.s32.totalorder %s23_s25, %s23_s25 }
   0x5   :  { %p339_p0 = scmp.ne.s32.totalorder %s23_s25, %s338_s26  ;;  %p344_p2 = scmp.lt.s32.totalorder %s338_s26, %s338_s26 }
   0x7   :  { %p345_p3 = por %p344_p2, %p343_p1 }
   0x9   :  { %p346_p4 = pnand %p345_p3, %p339_p0 }
   0xb   :  { %349 = shalt.err (!%p346_p4)
}
   0xc   :  { %s397_s27 = smov 64   ;;  %s398_s28 = smov 4  }
   0xd   :  { %28 = dma.hbm_to_vmem [thread:$0]  %s474_s1, 128, %s23_s25, [#allocation3], %s397_s27, %s397_s27, %s398_s28  }
   0xe   :  { %s399_s8 = smov [#allocation5]  }
   0xf   :  { %s39_s9 = sshll.u32 %s399_s8, 4  ;;  %s40_s9 = int_to_ptr.vmem [resolvable:$true] %s39_s9 }
  0x10   :  { %s358_s10 = scalar_lea.vmem %s40_s9, 16  ;;  %s362_s11 = scalar_lea.vmem %s40_s9, 32 }
  0x11   :  { %p359_p5 = scmp.ne.s32.totalorder %s40_s9, %s358_s10  ;;  %p363_p6 = scmp.lt.s32.totalorder %s40_s9, %s40_s9 }
  0x12   :  { %p364_p7 = scmp.lt.s32.totalorder %s362_s11, %s358_s10 }
  0x14   :  { %p365_p8 = por %p364_p7, %p363_p6 }
  0x16   :  { %p366_p9 = pnand %p365_p8, %p359_p5 }
  0x18   :  { %369 = shalt.err (!%p366_p9)
}
  0x19   :  { %42 = dma.hbm_to_vmem [thread:$0]  %s477_s4, 16, %s40_s9, [#allocation6]  }
  0x1a   :  { %390 = dma.done.wait [#allocation3], 128  }
  0x1b   :  { %391 = vsyncadd [#allocation3], 4294967168 }
  0x1c   :  { %392 = dma.done.wait [#allocation6], 16  }
  0x1d   :  { %393 = vsyncadd [#allocation6], 4294967280  ;;  %v400_v0 = vmov 0.0   ;;  %vm401_vm0 = vmmov 0   ;;  %v325_v1 = vld [vmem:[#allocation2] sm:$0xff]   ;;  %vm71_vm1 = vcmask 130048   ;;  %v252_v24 = vlaneseq }
  0x1e   :  { %296 = vmatprep.subr.bf16.mxu0 %v400_v0  ;;  %298 = vmatprep.mubr.msk.bf16.mxu0 %vm401_vm0, %v400_v0  ;;  %v54_v2 = vld [vmem:[%s473_s0] sm:$0xff]  ;;  %v326_v4 = vld [vmem:[%s476_s3 + $0x8] sm:$0xff]   ;;  %vm140_vm2 = vcmask 261120   ;;  %s402_s23 = smov [#allocation7]   ;;  %vm258_vm4 = vcmask 64512  }
  0x1f   :  { %302 = vmatprep.subr.bf16.mxu1 %v400_v0  ;;  %306 = vmatprep.mubr.msk.bf16.mxu1 %vm401_vm0, %v400_v0  ;;  %v55_v3 = vpack.c.bf16 %v54_v2, %v54_v2  ;;  %v327_v5 = vld [vmem:[%s476_s3] sm:$0xff]   ;;  %v328_v6 = vld [vmem:[%s478_s5 + $0x8] sm:$0xff]   ;;  %v253_v26 = vand.u32 127, %v252_v24 }
  0x20   :  { %297 = vmatpush3.bf16.msra.mxu0 %v325_v1  ;;  %303 = vmatpush3.bf16.msra.mxu1 %v326_v4  ;;  %v276_v7 = vld [vmem:[%s475_s2] ss:$0 sm:$0xff]  ;;  %v279_v16 = vld [vmem:[#allocation5] ss:$0 sm:$0xff] }
  0x21   :  { %310 = vmatprep.subr.bf16.mxu0 %v400_v0  ;;  %304 = vmatprep.subr.bf16.mxu1 %v400_v0  ;;  %v329_v15 = vld [vmem:[%s478_s5] sm:$0xff]   ;;  %s266_s5 = sshll.u32 %s402_s23, 4  ;;  %vm256_vm3 = vcmp.ge.s32.totalorder %v253_v26, 4  ;;  %s267_s5 = int_to_ptr.vmem [resolvable:$true] %s266_s5 }
  0x22   :  { %v283_v25 = vld [vmem:[%s479_s6] ss:$0 sm:$0xff]  ;;  %s370_s24 = scalar_lea.vmem %s267_s5, 128  ;;  %p375_p11 = scmp.lt.s32.totalorder %s267_s5, %s267_s5 }
  0x23   :  { %299 = vmatmul.mubr.msk.bf16.vlgmr.msra.gmra.mxu0 %vm71_vm1, %v55_v3  ;;  %p371_p10 = scmp.ne.s32.totalorder %s267_s5, %s370_s24  ;;  %p376_p12 = scmp.lt.s32.totalorder %s370_s24, %s370_s24 }
  0x24   :  { %314 = vmatprep.mubr.msk.bf16.mxu0 %vm401_vm0, %v400_v0  ;;  %305 = vmatpush3.bf16.msra.mxu1 %v327_v5 }
  0x25   :  { %311 = vmatpush3.bf16.msra.mxu0 %v328_v6  ;;  %p377_p13 = por %p376_p12, %p375_p11 }
  0x26   :  { %312 = vmatprep.subr.bf16.mxu0 %v400_v0 }
  0x27   :  { %p378_p0 = pnand %p377_p13, %p371_p10 }
  0x29   :  { %313 = vmatpush3.bf16.msra.mxu0 %v329_v15 }
  0xe3   :  { %v109_v8 = vpop.f32.mrf.mxu0 }
  0xe4   :  { %v110_v9 = vadd.f32 %v276_v7, %v109_v8 }
  0xe5   :  { %v300_v10 = vpop.f32.mrf.mxu0 }
  0xe6   :  { %v115_v11 = vmax.f32 %v110_v9, 0.0 }
  0xe7   :  { %v112_v12 = vpop.f32.mrf.mxu0 }
  0xe8   :  { %v116_v13 = vpack.c.bf16 %v115_v11, %v115_v11 }
  0xe9   :  { %v301_v14 = vpop.f32.mrf.mxu0 }
  0xea   :  { %307 = vmatmul.mubr.msk.bf16.vlgmr.msra.gmra.mxu1 %vm140_vm2, %v116_v13 }
 0x1aa   :  { %v178_v17 = vpop.f32.mrf.mxu1 }
 0x1ab   :  { %v179_v18 = vadd.f32 %v279_v16, %v178_v17 }
 0x1ac   :  { %v308_v19 = vpop.f32.mrf.mxu1 }
 0x1ad   :  { %v184_v20 = vmax.f32 %v179_v18, 0.0 }
 0x1ae   :  { %v181_v21 = vpop.f32.mrf.mxu1 }
 0x1af   :  { %v185_v22 = vpack.c.bf16 %v184_v20, %v184_v20 }
 0x1b0   :  { %v309_v23 = vpop.f32.mrf.mxu1 }
 0x1b1   :  { %315 = vmatmul.mubr.msk.bf16.vlgmr.msra.gmra.mxu0 %vm140_vm2, %v185_v22 }
 0x271   :  { %v246_v27 = vpop.f32.mrf.mxu0 }
 0x272   :  { %v247_v28 = vadd.f32 %v283_v25, %v246_v27 }
 0x273   :  { %v316_v29 = vpop.f32.mrf.mxu0 }
 0x274   :  { %v287_v30 = vclamps-f32 %v247_v28, 20.0 }
 0x275   :  { %v249_v31 = vpop.f32.mrf.mxu0 }
 0x276   :  { %v257_v32 = vsel %vm256_vm3, %v287_v30, %v247_v28 }
 0x277   :  { %v317_v33 = vpop.f32.mrf.mxu0  ;;  %259 = vst.msk [vmem:[#allocation7] sm:$0xff] %vm258_vm4, %v257_v32 }
 0x278   :  { %381 = shalt.err (!%p378_p0)
}
 0x279   :  { %269 = dma.vmem_to_hbm [thread:$0]  %s267_s5, 128, %s480_s7, [#allocation4]  }
 0x27a   :  { %394 = dma.done.wait [#allocation4], 128  }
 0x27b   :  { %395 = vsyncadd [#allocation4], 4294967168 }
 0x27c   :  { %273 = vsyncpa [#allocation3], 1 }
 0x27d   :  { %274 = vsyncpa [#allocation6], 1 }
 0x27e   :  { %275 = vsyncpa [#allocation4], 1 }

</bundles_post_ra>
